<compile_context>
chip_gen: v5e
topology: v5e:2x2
jax: 0.10.0
libtpu: 0.0.40
codegen_flags: <defaults>
</compile_context>

<pallas_src>
import functools
import math

import jax
import jax.numpy as jnp
from jax.experimental import pallas as pl
from jax.experimental.pallas import tpu as pltpu


# ---------------------------------------------------------------------------
# Kernels
# ---------------------------------------------------------------------------

def _sdpa_kernel(*refs, inv_temp, has_mask):
    """Exact-softmax kernel over the full key axis; also writes attn."""
    if has_mask:
        q_ref, k_ref, v_ref, m_ref, out_ref, attn_ref = refs
    else:
        q_ref, k_ref, v_ref, out_ref, attn_ref = refs
        m_ref = None
    # Fold temperature into the (gh, tq, Dk) q tile: Dk-wide multiply instead
    # of scaling the much larger (gh, tq, Lk) f32 score tile.
    qs = q_ref[0] * inv_temp
    s = jnp.einsum("gqd,gkd->gqk", qs, k_ref[0],
                   preferred_element_type=jnp.float32)
    if m_ref is not None:
        s = jnp.where(m_ref[0] == 0, -1.0e9, s)
    s_max = jnp.max(s, axis=-1, keepdims=True)
    e = jnp.exp(s - s_max)
    denom = jnp.sum(e, axis=-1, keepdims=True)
    attn_f32 = e * pl.reciprocal(denom, approx=False)
    # Single cast of the probabilities; reused for the PV matmul and, in the
    # common case attn dtype == v dtype, for the attn store.
    p = attn_f32.astype(v_ref.dtype)
    out = jnp.einsum("gqk,gkd->gqd", p, v_ref[0],
                     preferred_element_type=jnp.float32)
    out_ref[0] = out.astype(out_ref.dtype)
    if attn_ref.dtype == v_ref.dtype:
        attn_ref[0] = p
    else:
        attn_ref[0] = attn_f32.astype(attn_ref.dtype)


def _sdpa_flash_kernel(*refs, inv_temp, has_mask):
    """Attn-free flash kernel: Lk tiled, online softmax in f32 scratch."""
    if has_mask:
        q_ref, k_ref, v_ref, m_ref, out_ref, m_sc, l_sc, acc_sc = refs
    else:
        q_ref, k_ref, v_ref, out_ref, m_sc, l_sc, acc_sc = refs
        m_ref = None
    kv = pl.program_id(3)

    @pl.when(kv == 0)
    def _():
        m_sc[...] = jnp.full(m_sc.shape, -jnp.inf, m_sc.dtype)
        l_sc[...] = jnp.zeros(l_sc.shape, l_sc.dtype)
        acc_sc[...] = jnp.zeros(acc_sc.shape, acc_sc.dtype)

    qs = q_ref[0] * inv_temp
    s = jnp.einsum("gqd,gkd->gqk", qs, k_ref[0],
                   preferred_element_type=jnp.float32)
    if m_ref is not None:
        s = jnp.where(m_ref[0] == 0, -1.0e9, s)
    m_prev = m_sc[...]
    m_new = jnp.maximum(m_prev, jnp.max(s, axis=-1, keepdims=True))
    alpha = jnp.exp(m_prev - m_new)
    p = jnp.exp(s - m_new)
    l_sc[...] = alpha * l_sc[...] + jnp.sum(p, axis=-1, keepdims=True)
    acc_sc[...] = alpha * acc_sc[...] + jnp.einsum(
        "gqk,gkd->gqd", p.astype(v_ref.dtype), v_ref[0],
        preferred_element_type=jnp.float32)
    m_sc[...] = m_new

    @pl.when(kv == pl.num_programs(3) - 1)
    def _():
        out_ref[0] = (acc_sc[...] *
                      pl.reciprocal(l_sc[...], approx=False)
                      ).astype(out_ref.dtype)


# ---------------------------------------------------------------------------
# Tiling / budget helpers
# ---------------------------------------------------------------------------

def _min_sublane(dtype):
    isz = jnp.dtype(dtype).itemsize
    if isz >= 4:
        return 8
    if isz == 2:
        return 16
    return 32


def _vmem_budget():
    """(physical VMEM bytes, scoped limit to request) for the current chip."""
    phys = 64 * 1024 * 1024  # conservative default == v7x per-TC floor
    try:
        info = pltpu.get_tpu_info()
        phys = int(getattr(info, "vmem_capacity_bytes", phys))
    except Exception:
        pass
    # Headroom for Mosaic internal scratch: v7x (64 MiB) -> ~44 MiB scoped,
    # v5e/v6e (128 MiB) -> 64 MiB scoped ceiling.
    limit = min(int(phys * 0.7), 64 * 1024 * 1024)
    return phys, limit


def _gh_candidates(B, H):
    divs = [d for d in range(H, 0, -1) if H % d == 0]
    # Prefer head packings that keep >= 2 (batch, head-block) grid points so a
    # megacore (v7x) split lands on B/H, not on the k/v-reusing q/kv axes.
    return ([d for d in divs if B * (H // d) >= 2]
            + [d for d in divs if B * (H // d) < 2])


def _tile_candidates(L, min_tile, lane_aligned=False):
    cands = [L]
    for t in (2048, 1024, 768, 512, 256, 128, 64, 32, 16, 8):
        if t < L and t % min_tile == 0 and (not lane_aligned or t % 128 == 0):
            cands.append(t)
    return sorted(set(cands), reverse=True)


def _choose_blocks_full(B, H, Lq, Lk, Dk, Dv, in_isz, attn_isz, has_mask,
                        budget, min_tq):
    def usage(gh, tq):
        u = 2 * gh * tq * Dk * in_isz            # q block (double-buffered)
        u += 2 * gh * Lk * (Dk + Dv) * in_isz    # k + v blocks
        u += 2 * gh * tq * Dv * in_isz           # out block
        u += 2 * gh * tq * Lk * attn_isz         # attn block
        if has_mask:
            u += 2 * gh * tq * Lk                # int8 mask block (upper bound)
        u += 3 * gh * tq * Lk * 4                # f32 scores / exp / probs
        u += gh * tq * Dv * 4                    # f32 PV accumulator
        return u

    gh_cands = _gh_candidates(B, H)
    for tq in _tile_candidates(Lq, min_tq):
        for gh in gh_cands:
            if usage(gh, tq) <= budget:
                return gh, tq
    # Fallback: returning attn forces the full Lk row resident; callers that
    # do not need attn should use return_attn=False (Lk-tiled flash path).
    return 1, min(_tile_candidates(Lq, min_tq))


def _choose_blocks_flash(B, H, Lq, Lk, Dk, Dv, in_isz, has_mask, budget,
                         min_tq, kv_block=None):
    def usage(gh, tq, tk):
        u = 2 * gh * tq * Dk * in_isz            # q block
        u += 2 * gh * tk * (Dk + Dv) * in_isz    # k + v tiles
        u += 2 * gh * tq * Dv * in_isz           # out block
        if has_mask:
            u += 2 * gh * tq * tk                # int8 mask tile
        u += 2 * gh * tq * tk * 4                # f32 scores / probs
        u += gh * tq * (Dv + 2) * 4              # acc / running max / sum
        return u

    gh_cands = _gh_candidates(B, H)
    # kv tiles are also the lane dim of mask / score tiles: keep 128-aligned.
    tk_cands = ([kv_block] if kv_block is not None
                else _tile_candidates(Lk, 128, lane_aligned=True))
    for tq in _tile_candidates(Lq, min_tq):
        for tk in tk_cands:
            for gh in gh_cands:
                if usage(gh, tq, tk) <= budget:
                    return gh, tq, tk
    return 1, min(_tile_candidates(Lq, min_tq)), min(tk_cands)


def _prepare_mask(mask, Lk):
    m = jnp.asarray(mask)
    if m.ndim < 4:
        m = m.reshape((1,) * (4 - m.ndim) + m.shape)
    mB, mH, mLq, mLk = m.shape
    if mLk != Lk:  # broadcast only the key axis so softmax rows are complete
        m = jnp.broadcast_to(m, (mB, mH, mLq, Lk))
    # int8 storage (0 = masked): 4x less DMA/VMEM than int32 and no B/H/Lq
    # duplication in HBM (broadcast handled by the BlockSpec index_map).
    m = (m != 0).astype(jnp.int8)
    return m, mB, mH, mLq


# ---------------------------------------------------------------------------
# Wrapper
# ---------------------------------------------------------------------------

def scaled_dot_product_attention(q, k, v, temperature, mask=None,
                                 return_attn=True, kv_block=None):
    """Pallas TPU implementation of ScaledDotProductAttention.forward.

    q: (B, H, Lq, Dk), k: (B, H, Lk, Dk), v: (B, H, Lk, Dv)
    mask: optional, broadcastable to (B, H, Lq, Lk); 0 entries are masked.
    return_attn=True  -> returns (output, attn) like the PyTorch module.
    return_attn=False -> returns output only via an Lk-tiled flash kernel.
    """
    B, H, Lq, Dk = q.shape
    Lk = k.shape[2]
    Dv = v.shape[3]
    out_dtype = q.dtype
    attn_dtype = q.dtype  # PyTorch: attn comes back in the input dtype
    inv_temp = float(1.0 / float(temperature))

    has_mask = mask is not None
    if has_mask:
        m, mB, mH, mLq = _prepare_mask(mask, Lk)
    else:
        m, mB, mH, mLq = None, 1, 1, 1

    in_isz = jnp.dtype(q.dtype).itemsize
    attn_isz = jnp.dtype(attn_dtype).itemsize
    min_tq = _min_sublane(q.dtype)
    _, vmem_limit = _vmem_budget()
    block_budget = vmem_limit - 2 * 1024 * 1024  # margin for misc scratch

    args = [q, k, v]

    if return_attn:
        gh, tq = _choose_blocks_full(B, H, Lq, Lk, Dk, Dv, in_isz, attn_isz,
                                     has_mask, block_budget, min_tq)
        nq = pl.cdiv(Lq, tq)
        grid = (B, H // gh, nq)  # q innermost: k/v blocks reused per core

        in_specs = [
            pl.BlockSpec((1, gh, tq, Dk), lambda b, hb, qb: (b, hb, qb, 0)),
            pl.BlockSpec((1, gh, Lk, Dk), lambda b, hb, qb: (b, hb, 0, 0)),
            pl.BlockSpec((1, gh, Lk, Dv), lambda b, hb, qb: (b, hb, 0, 0)),
        ]
        if has_mask:
            def mask_index_map(b, hb, qb):
                return (b if mB == B else 0,
                        hb if mH == H else 0,
                        qb if mLq == Lq else 0,
                        0)
            in_specs.append(pl.BlockSpec(
                (1, gh if mH == H else 1, tq if mLq == Lq else 1, Lk),
                mask_index_map))
            args.append(m)
        out_specs = [
            pl.BlockSpec((1, gh, tq, Dv), lambda b, hb, qb: (b, hb, qb, 0)),
            pl.BlockSpec((1, gh, tq, Lk), lambda b, hb, qb: (b, hb, qb, 0)),
        ]
        # TODO(synk): on v5e, pl.Buffered(3) on the attn out_spec can hide the
        # single-vst-slot writeback when VMEM headroom remains.
        out_shape = (
            jax.ShapeDtypeStruct((B, H, Lq, Dv), out_dtype),
            jax.ShapeDtypeStruct((B, H, Lq, Lk), attn_dtype),
        )
        scratch_shapes = ()
        dims = ("parallel", "parallel", "arbitrary")
        kernel = functools.partial(_sdpa_kernel, inv_temp=inv_temp,
                                   has_mask=has_mask)
        bytes_accessed = ((q.size + k.size + v.size) * in_isz
                          + B * H * Lq * Dv * in_isz
                          + B * H * Lq * Lk * attn_isz
                          + (m.size if has_mask else 0))
    else:
        gh, tq, tk = _choose_blocks_flash(B, H, Lq, Lk, Dk, Dv, in_isz,
                                          has_mask, block_budget, min_tq,
                                          kv_block)
        nq = pl.cdiv(Lq, tq)
        nkv = pl.cdiv(Lk, tk)
        grid = (B, H // gh, nq, nkv)  # kv innermost: online-softmax reduction

        in_specs = [
            pl.BlockSpec((1, gh, tq, Dk), lambda b, hb, qb, kb: (b, hb, qb, 0)),
            pl.BlockSpec((1, gh, tk, Dk), lambda b, hb, qb, kb: (b, hb, kb, 0)),
            pl.BlockSpec((1, gh, tk, Dv), lambda b, hb, qb, kb: (b, hb, kb, 0)),
        ]
        if has_mask:
            def mask_index_map(b, hb, qb, kb):
                return (b if mB == B else 0,
                        hb if mH == H else 0,
                        qb if mLq == Lq else 0,
                        kb)
            in_specs.append(pl.BlockSpec(
                (1, gh if mH == H else 1, tq if mLq == Lq else 1, tk),
                mask_index_map))
            args.append(m)
        out_specs = [
            pl.BlockSpec((1, gh, tq, Dv), lambda b, hb, qb, kb: (b, hb, qb, 0)),
        ]
        # TODO(synk): when Dv < 128, a lane-dense (heads-packed) output layout
        # would turn masked vst.msk stores into full-width vst.
        out_shape = (jax.ShapeDtypeStruct((B, H, Lq, Dv), out_dtype),)
        scratch_shapes = (
            pltpu.VMEM((gh, tq, 1), jnp.float32),    # running max
            pltpu.VMEM((gh, tq, 1), jnp.float32),    # running sum
            pltpu.VMEM((gh, tq, Dv), jnp.float32),   # PV accumulator
        )
        dims = ("parallel", "parallel", "arbitrary", "arbitrary")
        kernel = functools.partial(_sdpa_flash_kernel, inv_temp=inv_temp,
                                   has_mask=has_mask)
        bytes_accessed = ((q.size + k.size + v.size) * in_isz
                          + B * H * Lq * Dv * in_isz
                          + (m.size if has_mask else 0))

    cost = pl.CostEstimate(
        flops=2 * B * H * Lq * Lk * (Dk + Dv),
        transcendentals=B * H * Lq * Lk,
        bytes_accessed=int(bytes_accessed),
    )
    cparams = pltpu.CompilerParams(
        dimension_semantics=dims,
        vmem_limit_bytes=int(vmem_limit),
    )

    fn = pl.pallas_call(
        kernel,
        out_shape=out_shape,
        grid=grid,
        in_specs=in_specs,
        out_specs=out_specs,
        scratch_shapes=scratch_shapes,
        compiler_params=cparams,
        cost_estimate=cost,
    )
    res = fn(*args)
    if return_attn:
        return res
    return res[0]


# ---------------------------------------------------------------------------
# Reference + self-test
# ---------------------------------------------------------------------------

def _reference(q, k, v, temperature, mask=None):
    attn = jnp.matmul(q / temperature, jnp.swapaxes(k, 2, 3))
    if mask is not None:
        attn = jnp.where(mask == 0, -1.0e9, attn)
    attn = jax.nn.softmax(attn, axis=-1)
    out = jnp.matmul(attn, v)
    return out, attn


if __name__ == "__main__":
    keys = jax.random.split(jax.random.PRNGKey(0), 8)

    # ---- small shapes consistent with the module (4-D (B, H, L, D)) -------
    B, H, Lq, Lk, Dk, Dv = 2, 2, 8, 8, 16, 16
    q = jax.random.normal(keys[0], (B, H, Lq, Dk), dtype=jnp.float32)
    k = jax.random.normal(keys[1], (B, H, Lk, Dk), dtype=jnp.float32)
    v = jax.random.normal(keys[2], (B, H, Lk, Dv), dtype=jnp.float32)
    temperature = math.sqrt(Dk)

    # 1) default path (mask=None): returns (output, attn) like the module
    out, attn = scaled_dot_product_attention(q, k, v, temperature)
    jax.block_until_ready((out, attn))
    ref_out, ref_attn = _reference(q, k, v, temperature)
    assert jnp.allclose(out, ref_out, atol=1e-5, rtol=1e-5)
    assert jnp.allclose(attn, ref_attn, atol=1e-5, rtol=1e-5)

    # 2) masked path (mask broadcast over heads, typical PyTorch usage)
    mask = (jax.random.uniform(keys[3], (B, 1, Lq, Lk)) > 0.3).astype(jnp.int32)
    out_m, attn_m = scaled_dot_product_attention(q, k, v, temperature,
                                                 mask=mask)
    jax.block_until_ready((out_m, attn_m))
    ref_out_m, ref_attn_m = _reference(q, k, v, temperature, mask=mask)
    assert jnp.allclose(out_m, ref_out_m, atol=1e-5, rtol=1e-5)
    assert jnp.allclose(attn_m, ref_attn_m, atol=1e-5, rtol=1e-5)

    # 3) attn-free flash path, forced kv tile so the multi-step online
    #    softmax (Lk tiling) is actually exercised.
    B2, H2, Lq2, Lk2, Dk2, Dv2 = 2, 2, 128, 256, 32, 32
    q2 = jax.random.normal(keys[4], (B2, H2, Lq2, Dk2), dtype=jnp.float32)
    k2 = jax.random.normal(keys[5], (B2, H2, Lk2, Dk2), dtype=jnp.float32)
    v2 = jax.random.normal(keys[6], (B2, H2, Lk2, Dv2), dtype=jnp.float32)
    mask2 = (jax.random.uniform(keys[7], (B2, 1, Lq2, Lk2)) > 0.3
             ).astype(jnp.int32)
    temp2 = math.sqrt(Dk2)

    out_f = scaled_dot_product_attention(q2, k2, v2, temp2, mask=mask2,
                                         return_attn=False, kv_block=128)
    out_f = jax.block_until_ready(out_f)
    ref_out_f, _ = _reference(q2, k2, v2, temp2, mask=mask2)
    assert jnp.allclose(out_f, ref_out_f, atol=1e-4, rtol=1e-4)

    out_fu = scaled_dot_product_attention(q2, k2, v2, temp2,
                                          return_attn=False, kv_block=128)
    out_fu = jax.block_until_ready(out_fu)
    ref_out_fu, _ = _reference(q2, k2, v2, temp2)
    assert jnp.allclose(out_fu, ref_out_fu, atol=1e-4, rtol=1e-4)

    print("KERNEL_OK")
</pallas_src>

<mosaic_0001>
module attributes {stable_mosaic.version = 11 : i64} {
  func.func @_sdpa_kernel(%arg0: i32, %arg1: i32, %arg2: i32, %arg3: memref<1x2x8x16xf32, #tpu.memory_space<vmem>>, %arg4: memref<1x2x8x16xf32, #tpu.memory_space<vmem>>, %arg5: memref<1x2x8x16xf32, #tpu.memory_space<vmem>>, %arg6: memref<1x2x8x16xf32, #tpu.memory_space<vmem>>, %arg7: memref<1x2x8x8xf32, #tpu.memory_space<vmem>>) attributes {dimension_semantics = [#tpu.dimension_semantics<parallel>, #tpu.dimension_semantics<parallel>, #tpu.dimension_semantics<arbitrary>], iteration_bounds = array<i64: 2, 1, 1>, scalar_prefetch = 0 : i64, scratch_operands = 0 : i64, tpu.core_type = #tpu.core_type<tc>, window_params = [{transform_indices = @transform_0, window_bounds = array<i64: 1, 2, 8, 16>}, {transform_indices = @transform_1, window_bounds = array<i64: 1, 2, 8, 16>}, {transform_indices = @transform_2, window_bounds = array<i64: 1, 2, 8, 16>}, {transform_indices = @transform_3, window_bounds = array<i64: 1, 2, 8, 16>}, {transform_indices = @transform_4, window_bounds = array<i64: 1, 2, 8, 8>}]} {
    %c0 = arith.constant 0 : index
    %c0_0 = arith.constant 0 : index
    %c0_1 = arith.constant 0 : index
    %c0_2 = arith.constant 0 : index
    %0 = vector.load %arg3[%c0, %c0_0, %c0_1, %c0_2] : memref<1x2x8x16xf32, #tpu.memory_space<vmem>>, vector<1x2x8x16xf32>
    %1 = vector.shape_cast %0 : vector<1x2x8x16xf32> to vector<2x8x16xf32>
    %cst = arith.constant 2.500000e-01 : f32
    %2 = vector.broadcast %cst : f32 to vector<2x8x16xf32>
    %3 = arith.mulf %1, %2 : vector<2x8x16xf32>
    %c0_3 = arith.constant 0 : index
    %c0_4 = arith.constant 0 : index
    %c0_5 = arith.constant 0 : index
    %c0_6 = arith.constant 0 : index
    %4 = vector.load %arg4[%c0_3, %c0_4, %c0_5, %c0_6] : memref<1x2x8x16xf32, #tpu.memory_space<vmem>>, vector<1x2x8x16xf32>
    %5 = vector.shape_cast %4 : vector<1x2x8x16xf32> to vector<2x8x16xf32>
    "tpu.trace_start"() <{level = 10 : i32, message = "gqd,gkd->gqk"}> : () -> ()
    %cst_7 = arith.constant dense<0.000000e+00> : vector<2x8x8xf32>
    %6 = tpu.matmul %3, %5, %cst_7 {dimension_numbers = #tpu.dot_dimension_numbers<[2], [2], [1], [1], [0, 0, 0, 1, 1, 1], [0], [0]>} : vector<2x8x16xf32>, vector<2x8x16xf32>, vector<2x8x8xf32> -> vector<2x8x8xf32>
    "tpu.trace_stop"() : () -> ()
    %cst_8 = arith.constant dense<0xFF800000> : vector<2x8xf32>
    %7 = vector.multi_reduction <maximumf>, %6, %cst_8 [2] : vector<2x8x8xf32> to vector<2x8xf32>
    %8 = vector.shape_cast %7 : vector<2x8xf32> to vector<2x8x1xf32>
    %9 = vector.broadcast %8 : vector<2x8x1xf32> to vector<2x8x8xf32>
    %10 = arith.subf %6, %9 : vector<2x8x8xf32>
    %11 = math.exp %10 : vector<2x8x8xf32>
    %cst_9 = arith.constant dense<0.000000e+00> : vector<2x8xf32>
    %12 = vector.multi_reduction <add>, %11, %cst_9 [2] : vector<2x8x8xf32> to vector<2x8xf32>
    %13 = vector.shape_cast %12 : vector<2x8xf32> to vector<2x8x1xf32>
    %14 = tpu.reciprocal %13 : vector<2x8x1xf32> -> vector<2x8x1xf32>
    %15 = vector.broadcast %14 : vector<2x8x1xf32> to vector<2x8x8xf32>
    %16 = arith.mulf %11, %15 : vector<2x8x8xf32>
    %c0_10 = arith.constant 0 : index
    %c0_11 = arith.constant 0 : index
    %c0_12 = arith.constant 0 : index
    %c0_13 = arith.constant 0 : index
    %17 = vector.load %arg5[%c0_10, %c0_11, %c0_12, %c0_13] : memref<1x2x8x16xf32, #tpu.memory_space<vmem>>, vector<1x2x8x16xf32>
    %18 = vector.shape_cast %17 : vector<1x2x8x16xf32> to vector<2x8x16xf32>
    "tpu.trace_start"() <{level = 10 : i32, message = "gqk,gkd->gqd"}> : () -> ()
    %cst_14 = arith.constant dense<0.000000e+00> : vector<2x8x16xf32>
    %19 = tpu.matmul %16, %18, %cst_14 {dimension_numbers = #tpu.dot_dimension_numbers<[2], [1], [1], [2], [0, 0, 0, 1, 1, 2], [0], [0]>} : vector<2x8x8xf32>, vector<2x8x16xf32>, vector<2x8x16xf32> -> vector<2x8x16xf32>
    "tpu.trace_stop"() : () -> ()
    %c0_15 = arith.constant 0 : index
    %c0_16 = arith.constant 0 : index
    %c0_17 = arith.constant 0 : index
    %c0_18 = arith.constant 0 : index
    %20 = vector.load %arg6[%c0_15, %c0_16, %c0_17, %c0_18] : memref<1x2x8x16xf32, #tpu.memory_space<vmem>>, vector<1x2x8x16xf32>
    %21 = vector.shape_cast %20 : vector<1x2x8x16xf32> to vector<2x8x16xf32>
    %22 = vector.shape_cast %19 : vector<2x8x16xf32> to vector<1x2x8x16xf32>
    tpu.vector_store %arg6[%c0_15, %c0_16, %c0_17, %c0_18], %22 {strides = array<i32>} : memref<1x2x8x16xf32, #tpu.memory_space<vmem>>, vector<1x2x8x16xf32>,
    %c0_19 = arith.constant 0 : index
    %c0_20 = arith.constant 0 : index
    %c0_21 = arith.constant 0 : index
    %c0_22 = arith.constant 0 : index
    %23 = vector.load %arg7[%c0_19, %c0_20, %c0_21, %c0_22] : memref<1x2x8x8xf32, #tpu.memory_space<vmem>>, vector<1x2x8x8xf32>
    %24 = vector.shape_cast %23 : vector<1x2x8x8xf32> to vector<2x8x8xf32>
    %25 = vector.shape_cast %16 : vector<2x8x8xf32> to vector<1x2x8x8xf32>
    tpu.vector_store %arg7[%c0_19, %c0_20, %c0_21, %c0_22], %25 {strides = array<i32>} : memref<1x2x8x8xf32, #tpu.memory_space<vmem>>, vector<1x2x8x8xf32>,
    return
  }
  func.func @transform_0(%arg0: i32, %arg1: i32, %arg2: i32) -> (i32, i32, i32, i32) {
    %c0_i32 = arith.constant 0 : i32
    %c0_i32_0 = arith.constant 0 : i32
    return %arg0, %arg1, %arg2, %c0_i32 : i32, i32, i32, i32
  }
  func.func @transform_1(%arg0: i32, %arg1: i32, %arg2: i32) -> (i32, i32, i32, i32) {
    %c0_i32 = arith.constant 0 : i32
    %c0_i32_0 = arith.constant 0 : i32
    %c0_i32_1 = arith.constant 0 : i32
    return %arg0, %arg1, %c0_i32, %c0_i32_0 : i32, i32, i32, i32
  }
  func.func @transform_2(%arg0: i32, %arg1: i32, %arg2: i32) -> (i32, i32, i32, i32) {
    %c0_i32 = arith.constant 0 : i32
    %c0_i32_0 = arith.constant 0 : i32
    %c0_i32_1 = arith.constant 0 : i32
    return %arg0, %arg1, %c0_i32, %c0_i32_0 : i32, i32, i32, i32
  }
  func.func @transform_3(%arg0: i32, %arg1: i32, %arg2: i32) -> (i32, i32, i32, i32) {
    %c0_i32 = arith.constant 0 : i32
    %c0_i32_0 = arith.constant 0 : i32
    return %arg0, %arg1, %arg2, %c0_i32 : i32, i32, i32, i32
  }
  func.func @transform_4(%arg0: i32, %arg1: i32, %arg2: i32) -> (i32, i32, i32, i32) {
    %c0_i32 = arith.constant 0 : i32
    %c0_i32_0 = arith.constant 0 : i32
    return %arg0, %arg1, %arg2, %c0_i32 : i32, i32, i32, i32
  }
}

</mosaic_0001>

<bundles_post_ra>
// kernel: tpu_custom_call.1
= control target key start
LH: loop header
LB: loop body
LE: loop exit
PB: predicated region body
PF: predicated region fallthrough
CT: control target
= control target key end

     0   :  { %s1303_s0 = inlined_call_operand.hbm [shape: f32[2,2,8,16], index: 0, kind: input, shape index: {}]   ;;  %s1304_s1 = inlined_call_operand.hbm [shape: f32[2,2,8,16], index: 1, kind: input, shape index: {}]   ;;  %s1305_s2 = inlined_call_operand.hbm [shape: f32[2,2,8,16], index: 2, kind: input, shape index: {}]   ;;  %s1306_s3 = inlined_call_operand.hbm [shape: f32[2,2,8,16], index: 3, kind: output, shape index: {0}]   ;;  %s1307_s4 = inlined_call_operand.hbm [shape: f32[2,2,8,8], index: 4, kind: output, shape index: {1}]  }
   0x1   :  { %1314 = sst [smem:[#allocation21_spill]] %s1304_s1 }
   0x2   :  { %10 = vsyncpa [#allocation3], 0 }
   0x3   :  { %12 = vsyncpa [#allocation3 + $0x1], 0 }
   0x4   :  { %13 = vsyncpa [#allocation6], 0 }
   0x5   :  { %15 = vsyncpa [#allocation6 + $0x1], 0 }
   0x6   :  { %16 = vsyncpa [#allocation4], 0 }
   0x7   :  { %18 = vsyncpa [#allocation4 + $0x1], 0 }
   0x8   :  { %19 = vsyncpa [#allocation10], 0 }
   0x9   :  { %21 = vsyncpa [#allocation10 + $0x1], 0  ;;  %s1105_s15 = smov 0   ;;  %s1107_s16 = smov 0  }
   0xa   :  { %s1109_s17 = smov 0   ;;  %s1111_s18 = smov 0  }
   0xb   :  { %s1113_s19 = smov 0   ;;  %s1115_s20 = smov 0  }
   0xc LB: > { %1315 = sst [smem:[#allocation15_spill]] %s1062_s17  ;;  %s1136_s21 = sadd.s32 4294967295, %s1074_s20   ;;  %s1074_s20 = sphi %s1115_s20, %s27_s20   ;;  %s1070_s19 = sphi %s1113_s19, %s1333_s19   ;;  %s1066_s18 = sphi %s1111_s18, %s1332_s18   ;;  %s1062_s17 = sphi %s1109_s17, %s1331_s17   ;;  %s1058_s16 = sphi %s1107_s16, %s1335_s16   ;;  %s1054_s15 = sphi %s1105_s15, %s1334_s15  }
   0xd   : > { %1316 = sst [smem:[#allocation16_spill]] %s1070_s19  ;;  %s740_s22 = sadd.s32 4294967294, %s1074_s20  }
   0xe   : > { %1317 = sst [smem:[#allocation17_spill]] %s1074_s20  ;;  %s46_s23 = sadd.s32 1, %s1070_s19 }
   0xf   : > { %s57_s24 = sadd.s32 1, %s1062_s17  ;;  %p48_p0 = scmp.ge.s32.totalorder %s46_s23, 2 }
  0x10   : > { %p64_p1 = scmp.ne.s32.totalorder %s1062_s17, %s1058_s16  ;;  %p65_p2 = scmp.eq.s32.totalorder %s1074_s20, 0 }
  0x11   : > { %p70_p3 = scmp.ne.s32.totalorder %s1058_s16, %s1054_s15  ;;  %s1337_s23 = smov (%p48_p0, %s46_s23), 0 }
  0x12   : > { %1318 = sst [smem:[#allocation18_spill]] %s1337_s23  ;;  %p1148_p4 = por %p65_p2, %p64_p1 }
  0x13   : > { %p71_p5 = scmp.eq.s32.totalorder %s1136_s21, 0  ;;  %s50_s26 = ssub.s32 %s1070_s19, %s1337_s23 }
  0x14   : > { %p154_p6 = scmp.eq.s32.totalorder %s1136_s21, 1  ;;  %p55_p7 = scmp.eq.s32.totalorder %s50_s26, 0 }
  0x15   : > { %p1156_p8 = por %p71_p5, %p70_p3  ;;  %p160_p10 = scmp.eq.s32.totalorder %s740_s22, 1 }
  0x16   : > { %p1160_p9 = por %p154_p6, %p64_p1  ;;  %p742_p12 = scmp.ge.s32.totalorder %s1074_s20, 2 }
  0x17   : > { %s1165_s29 = scalar_select %p55_p7, %s1062_s17, %s57_s24  }
  0x18   : > { %p1167_p11 = por %p160_p10, %p70_p3  ;;  %p804_p13 = scmp.lt.s32.totalorder %s1074_s20, 2 }
  0x19   : > { %1322 = sst [smem:[#allocation19_spill]] %s1165_s29  ;;  %s210_s5 = sand.u32 1, %s1062_s17  }
  0x1a   : > { %s1323_s30 = scalar_select %p1167_p11, 1, 0 }
  0x1b   : > { %s1174_s6 = sshll.u32 %s210_s5, 4  ;;  %s772_s7 = sshll.u32 %s1070_s19, 4 }
  0x1c   : > { %1324 = sst [smem:[#allocation20_spill]] %s1323_s30  ;;  %p1179_p0 = pnand %p804_p13, %p1148_p4 }
  0x1d   : > { %s235_s9 = sand.u32 1, %s1074_s20   ;;  %s1326_s1 = sld [smem:[#allocation21_spill]] }
  0x1e   : > { %s239_s14 = scalar_lea.vmem [#allocation5], %s1174_s6  ;;  %s236_s24 = scalar_lea.sflag [#allocation6], %s235_s9 }
  0x1f   : > { %s249_s22 = sshll.u32 %s239_s14, 4  ;;  %s1076_s26 = smov 128   ;;  %s250_s22 = int_to_ptr.vmem [resolvable:$true] %s249_s22 }
  0x20   : > { %s1077_s25 = smov 8   ;;  %p752_p1 = scmp.ge.s32.totalorder %s1074_s20, 1 }
  0x21   : > { %p281_p2 = scmp.lt.s32.totalorder %s1074_s20, 3  ;;  %s211_s9 = scalar_lea.sflag [#allocation3], %s210_s5 }
  0x22   : > { %s270_s29 = scalar_lea.hbm %s1305_s2, %s772_s7  ;;  %s263_s20 = scalar_lea.vmem [#allocation7], %s1174_s6 }
  0x23   : > { %s246_s12 = scalar_lea.hbm %s1326_s1, %s772_s7  ;;  %p1192_p3 = pnand %p752_p1, %p281_p2 }
  0x24   : > { %s247_s13 = sshll.u32 %s246_s12, 4  ;;  %s222_s12 = scalar_lea.hbm %s1303_s0, %s772_s7  ;;  %s248_s13 = int_to_ptr.hbm [resolvable:$true] %s247_s13 }
  0x25   : > { %793 = dma.hbm_to_vmem [thread:$0]  (!%p1179_p0), %s248_s13, 256, %s250_s22, %s236_s24, %s1076_s26, %s1076_s26, %s1077_s25  }
  0x26   : > { %s223_s14 = sshll.u32 %s222_s12, 4  ;;  %s214_s1 = scalar_lea.vmem [#allocation2], %s1174_s6  ;;  %s224_s14 = int_to_ptr.hbm [resolvable:$true] %s223_s14 }
  0x27   : > { %s225_s19 = sshll.u32 %s214_s1, 4  ;;  %s271_s17 = sshll.u32 %s270_s29, 4  ;;  %s226_s19 = int_to_ptr.vmem [resolvable:$true] %s225_s19  ;;  %s272_s17 = int_to_ptr.hbm [resolvable:$true] %s271_s17 }
  0x28   : > { %790 = dma.hbm_to_vmem [thread:$0]  (!%p1179_p0), %s224_s14, 256, %s226_s19, %s211_s9, %s1076_s26, %s1076_s26, %s1077_s25  }
  0x29   : > { %s273_s30 = sshll.u32 %s263_s20, 4  ;;  %285 = sbr.rel (%p1192_p3) target bundleno = 587 (0x24b), region = 32  ;;  %s274_s30 = int_to_ptr.vmem [resolvable:$true] %s273_s30 }
  0x2a   : > { %796 = dma.hbm_to_vmem [thread:$0]  (!%p1179_p0), %s272_s17, 256, %s274_s30, %s236_s24, %s1076_s26, %s1076_s26, %s1077_s25  }
  0x2b   : > { %s1211_s1 = sand.u32 (!%p1192_p3), 1, %s1058_s16  }
  0x2c   : > { %s1214_s19 = sshll.u32 (!%p1192_p3), %s1211_s1, 4  ;;  %s288_s5 = scalar_lea.sflag (!%p1192_p3), [#allocation3], %s1211_s1 }
  0x2d   : > { %s291_s29 = scalar_lea.vmem (!%p1192_p3), [#allocation2], %s1214_s19 }
  0x2e   : > { %1037 = dma.done.wait (%p1156_p8), %s288_s5, 256  }
  0x2f   : > { %1039 = vsyncadd (%p1156_p8), %s288_s5, 4294967040  ;;  %s297_s17 = sand.u32 1, %s1136_s21   ;;  %s301_s23 = scalar_lea.vmem [#allocation5], %s1214_s19 }
  0x30   : > { %s298_s20 = scalar_lea.sflag [#allocation6], %s297_s17 }
  0x31   : > { %1041 = dma.done.wait (%p1156_p8), %s298_s20, 512  }
  0x32   : > { %1043 = vsyncadd (%p1156_p8), %s298_s20, 4294966784  ;;  %vm363_vm0 = vcmask 130048   ;;  %v361_v0 = vld [vmem:[%s301_s23] sm:$0xff]  ;;  %v362_v2 = vld [vmem:[%s301_s23 + $0x8] sm:$0xff]  ;;  %vm416_vm1 = vcmask 64512   ;;  %s311_s21 = scalar_lea.vmem [#allocation7], %s1214_s19 }
  0x33   : > { %v357_v1 = vld [vmem:[%s291_s29] sm:$0xff]  ;;  %758 = vmatpush.xpose.msk.msra.mxu0 %vm363_vm0, %v361_v0  ;;  %760 = vmatpush.xpose.msk.msra.mxu1 %vm363_vm0, %v362_v2  ;;  %v358_v4 = vld [vmem:[%s291_s29 + $0x8] sm:$0xff]  ;;  %s351_s27 = scalar_lea.vmem [#allocation9], %s1214_s19  ;;  %s775_s30 = sshll.u32 %s1066_s18, 4 }
  0x34   : > { %v359_v3 = vmul.f32 0.25, %v357_v1  ;;  %v360_v5 = vmul.f32 0.25, %v358_v4  ;;  %v465_v20 = vld [vmem:[%s311_s21] sm:$0xff]  ;;  %v466_v21 = vld [vmem:[%s311_s21 + $0x8] sm:$0xff]  ;;  %s558_s6 = sshll.u32 %s351_s27, 4  ;;  %s557_s24 = scalar_lea.hbm %s1307_s4, %s775_s30  ;;  %s559_s6 = int_to_ptr.vmem [resolvable:$true] %s558_s6 }
  0x35   : > { %485 = vmatpush.msra.mxu2 %v465_v20  ;;  %508 = vmatpush.msra.mxu3 %v466_v21  ;;  %s560_s26 = sshll.u32 %s557_s24, 4  ;;  %s523_s25 = scalar_lea.sflag [#allocation10], %s1211_s1  ;;  %s561_s26 = int_to_ptr.hbm [resolvable:$true] %s560_s26 }
  0x36   : > { %759 = vmatmul.msk.f32.vlgmr.msra.gmra.mxu0 %vm363_vm0, %v359_v3  ;;  %761 = vmatmul.msk.f32.vlgmr.msra.gmra.mxu1 %vm363_vm0, %v360_v5  ;;  %s970_s10 = sshra.s32 %s561_s26, 4  ;;  %s976_s18 = scalar_lea.hbm %s1307_s4, 32  ;;  %s971_s10 = int_to_ptr.hbm [resolvable:$true] %s970_s10 }
  0x37   : > { %s972_s11 = scalar_lea.hbm %s971_s10, 16  ;;  %p977_p7 = scmp.lt.s32.totalorder %s971_s10, %s1307_s4 }
  0x38   : > { %p973_p4 = scmp.ne.s32.totalorder %s971_s10, %s972_s11  ;;  %p978_p8 = scmp.lt.s32.totalorder %s976_s18, %s972_s11 }
  0x3a   : > { %p974_p5 = pnand %p973_p4, %p1160_p9  ;;  %p979_p10 = por %p978_p8, %p977_p7 }
  0x3c   : > { %p975_p6 = pneg %p974_p5 }
  0x3e   : > { %p980_p13 = pnand %p979_p10, %p975_p6 }
  0xb3   : > { %v387_v6 = vpop.f32.mrf.mxu0  ;;  %v413_v8 = vpop.f32.mrf.mxu1 }
  0xb4   : > { %v417_v7 = vsel %vm416_vm1, %v387_v6, -inf  ;;  %v420_v9 = vsel %vm416_vm1, %v413_v8, -inf }
  0xb5   : > { %418 = vmax.xlane.f32.xlu0 %v417_v7 }
  0xbd   : > { %421 = vmax.xlane.f32.xlu0 %v420_v9 }
 0x128   : > { %v419_v10 = vpop.xlane.xlu0 %418 }
 0x129   : > { %v423_v11 = vsub.f32 %v387_v6, %v419_v10 }
 0x12b   : > { %v425_v12 = vmul.f32 1.442695, %v423_v11 }
 0x12d   : > { %858 = vpow2.f32 %v425_v12 }
 0x130   : > { %v422_v13 = vpop.xlane.xlu0 %421 }
 0x131   : > { %v424_v14 = vsub.f32 %v413_v8, %v422_v13 }
 0x133   : > { %v859_v15 = vpop.eup %858  ;;  %v427_v16 = vmul.f32 1.442695, %v424_v14 }
 0x134   : > { %v429_v17 = vsel %vm416_vm1, %v859_v15, 0.0 }
 0x135   : > { %860 = vpow2.f32 %v427_v16  ;;  %430 = vadd.xlane.f32.xlu1 %v429_v17 }
 0x13b   : > { %v861_v18 = vpop.eup %860 }
 0x13c   : > { %v432_v19 = vsel %vm416_vm1, %v861_v18, 0.0 }
 0x13d   : > { %433 = vadd.xlane.f32.xlu1 %v432_v19 }
 0x1a8   : > { %v431_v22 = vpop.xlane.xlu1 %430 }
 0x1a9   : > { %862 = vrcp.f32 %v431_v22  ;;  %v446_v27 = vand.u32 2147483648, %v431_v22  ;;  %v444_v29 = vand.u32 2147483647, %v431_v22  ;;  %vm440_vm3 = vweird.f32 %v431_v22 }
 0x1ab   : > { %v447_v32 = vor.u32 1.1754944e-38, %v446_v27  ;;  %vm445_vm5 = vcmp.eq.f32.partialorder %v444_v29, 8.507059e+37 }
 0x1af   : > { %v863_v23 = vpop.eup %862 }
 0x1b0   : > { %v436_v24 = vmul.f32 %v863_v23, %v431_v22  ;;  %v434_v25 = vpop.xlane.xlu1 %433  ;;  %vm441_vm2 = vweird.f32 %v863_v23 }
 0x1b1   : > { %864 = vrcp.f32 %v434_v25  ;;  %vm442_vm4 = vmor %vm440_vm3, %vm441_vm2  ;;  %v460_v38 = vand.u32 2147483648, %v434_v25  ;;  %v458_v40 = vand.u32 2147483647, %v434_v25  ;;  %vm454_vm7 = vweird.f32 %v434_v25 }
 0x1b2   : > { %v437_v26 = vsub.f32 1.0, %v436_v24 }
 0x1b3   : > { %v461_v42 = vor.u32 1.1754944e-38, %v460_v38  ;;  %vm459_vm9 = vcmp.eq.f32.partialorder %v458_v40, 8.507059e+37 }
 0x1b4   : > { %v438_v28 = vmul.f32 %v863_v23, %v437_v26 }
 0x1b6   : > { %v439_v30 = vadd.f32 %v863_v23, %v438_v28 }
 0x1b7   : > { %v865_v31 = vpop.eup %864 }
 0x1b8   : > { %v450_v33 = vmul.f32 %v865_v31, %v434_v25  ;;  %v443_v34 = vsel %vm442_vm4, %v863_v23, %v439_v30  ;;  %vm455_vm6 = vweird.f32 %v865_v31 }
 0x1b9   : > { %v448_v35 = vsel %vm445_vm5, %v447_v32, %v443_v34  ;;  %vm456_vm8 = vmor %vm454_vm7, %vm455_vm6 }
 0x1ba   : > { %v451_v36 = vsub.f32 1.0, %v450_v33  ;;  %v463_v37 = vmul.f32 %v859_v15, %v448_v35 }
 0x1bc   : > { %v452_v39 = vmul.f32 %v865_v31, %v451_v36  ;;  %762 = vmatmul.msk.f32.vlgmr.msra.gmra.mxu2 %vm416_vm1, %v463_v37  ;;  %515 = vst.msk [vmem:[%s351_s27] sm:$0xff] %vm416_vm1, %v463_v37 }
 0x1be   : > { %v453_v41 = vadd.f32 %v865_v31, %v452_v39 }
 0x1c0   : > { %v457_v43 = vsel %vm456_vm8, %v865_v31, %v453_v41 }
 0x1c1   : > { %v462_v44 = vsel %vm459_vm9, %v461_v42, %v457_v43 }
 0x1c2   : > { %v464_v45 = vmul.f32 %v861_v18, %v462_v44 }
 0x1c4   : > { %763 = vmatmul.msk.f32.vlgmr.msra.gmra.mxu3 %vm416_vm1, %v464_v45  ;;  %516 = vst.msk [vmem:[%s351_s27 + $0x8] sm:$0xff] %vm416_vm1, %v464_v45 }
 0x1c5   : > { %983 = shalt.err (!%p980_p13)
}
 0x1c6   : > { %s1078_s22 = smov 128   ;;  %s1079_s5 = smov 8  }
 0x1c7   : > { %784 = dma.vmem_to_hbm [thread:$0]  (%p1160_p9), %s559_s6, 256, %s561_s26, %s523_s25, %s1078_s22, %s1078_s22, %s1079_s5  }
 0x1c8   : > { %s344_s29 = scalar_lea.vmem [#allocation8], %s1214_s19  ;;  %s537_s23 = scalar_lea.hbm %s1306_s3, %s775_s30 }
 0x1c9   : > { %s538_s21 = sshll.u32 %s344_s29, 4  ;;  %s540_s27 = sshll.u32 %s537_s23, 4  ;;  %s539_s21 = int_to_ptr.vmem [resolvable:$true] %s538_s21  ;;  %s541_s27 = int_to_ptr.hbm [resolvable:$true] %s540_s27 }
 0x1ca   : > { %s518_s7 = scalar_lea.sflag [#allocation4], %s1211_s1  ;;  %s998_s8 = sshra.s32 %s541_s27, 4  ;;  %s999_s8 = int_to_ptr.hbm [resolvable:$true] %s998_s8 }
 0x1cb   : > { %s1000_s6 = scalar_lea.hbm %s999_s8, 16  ;;  %s1004_s26 = scalar_lea.hbm %s1306_s3, 32 }
 0x1cc   : > { %p1001_p0 = scmp.ne.s32.totalorder %s999_s8, %s1000_s6  ;;  %p1005_p3 = scmp.lt.s32.totalorder %s999_s8, %s1306_s3 }
 0x1cd   : > { %p1006_p4 = scmp.lt.s32.totalorder %s1004_s26, %s1000_s6 }
 0x1ce   : > { %p1002_p1 = pnand %p1001_p0, %p1160_p9 }
 0x1cf   : > { %p1007_p5 = por %p1006_p4, %p1005_p3 }
 0x1d0   : > { %p1003_p2 = pneg %p1002_p1 }
 0x1d2   : > { %p1008_p6 = pnand %p1007_p5, %p1003_p2 }
 0x23f   : > { %v487_v46 = vpop.f32.mrf.mxu2 }
 0x240   : > { %513 = vst.msk [vmem:[%s344_s29] sm:$0xff] %vm363_vm0, %v487_v46 }
 0x247   : > { %v510_v47 = vpop.f32.mrf.mxu3 }
 0x248   : > { %514 = vst.msk [vmem:[%s344_s29 + $0x8] sm:$0xff] %vm363_vm0, %v510_v47 }
 0x249   : > { %1011 = shalt.err (!%p1008_p6)
}
 0x24a   : > { %783 = dma.vmem_to_hbm [thread:$0]  (%p1160_p9), %s539_s21, 256, %s541_s27, %s518_s7, %s1078_s22, %s1078_s22, %s1079_s5  }
 0x24b PF: > { %s1329_s10 = sld [smem:[#allocation17_spill]]  ;;  %s575_s11 = sand.u32 1, %s1054_s15  }
 0x24c   : > { %p798_p7 = pnand %p742_p12, %p1167_p11  ;;  %s576_s12 = scalar_lea.sflag [#allocation4], %s575_s11 }
 0x24e   : > { %p799_p8 = pneg %p798_p7 }
 0x250   : > { %1045 = dma.done.wait (%p799_p8), %s576_s12, 256  }
 0x251   : > { %1047 = vsyncadd (%p799_p8), %s576_s12, 4294967040  ;;  %s586_s14 = scalar_lea.sflag [#allocation10], %s575_s11 }
 0x252   : > { %1049 = dma.done.wait (%p799_p8), %s586_s14, 256  }
 0x253   : > { %1051 = vsyncadd (%p799_p8), %s586_s14, 4294967040  ;;  %s27_s20 = sadd.s32 1, %s1329_s10   ;;  %s1330_s28 = sld [smem:[#allocation15_spill]] }
 0x254   : > { %p24_p10 = scmp.ge.s32.totalorder %s27_s20, 4   ;;  %s1331_s17 = sld [smem:[#allocation19_spill]] }
 0x255   : > { %s1332_s18 = sld [smem:[#allocation16_spill]]  ;;  %s1334_s15 = smov %s1058_s16 }
 0x256   : > { %s1333_s19 = sld [smem:[#allocation18_spill]]  ;;  %26 = sbr.rel (!%p24_p10) target bundleno = 12 (0xc), region = 118 }
 0x259   : > { %s1335_s16 = smov %s1330_s28 }
 0x25b   :  { %592 = vsyncpa [#allocation3], 1 }
 0x25c   :  { %594 = vsyncpa [#allocation3 + $0x1], 1 }
 0x25d   :  { %595 = vsyncpa [#allocation6], 1 }
 0x25e   :  { %597 = vsyncpa [#allocation6 + $0x1], 1 }
 0x25f   :  { %598 = vsyncpa [#allocation4], 1 }
 0x260   :  { %600 = vsyncpa [#allocation4 + $0x1], 1 }
 0x261   :  { %601 = vsyncpa [#allocation10], 1 }
 0x262   :  { %603 = vsyncpa [#allocation10 + $0x1], 1 }

</bundles_post_ra>
